<compile_context>
chip_gen: v5e
topology: v5e:2x2
jax: 0.10.0
libtpu: 0.0.40
codegen_flags: <defaults>
</compile_context>

<pallas_src>
import math

import jax
import jax.numpy as jnp
from jax import lax
from jax.experimental import pallas as pl
from jax.experimental.pallas import tpu as pltpu

# ---- small, deterministic configuration ----
N_FFT = 16
HOP = N_FFT // 2                 # 8  (50% overlap)
F_BINS = N_FFT // 2 + 1          # 9
HIDDEN = 8


def _hann(n):
    i = jnp.arange(n, dtype=jnp.float32)
    return 0.5 * (1.0 - jnp.cos(2.0 * jnp.pi * i / n))


def make_stft_bases():
    """Transposed, hop-split windowed DFT bases.

    a_pack (4, F, HOP): [re_top, re_bot, im_top, im_bot] so that
        re(F,C) = a_pack[0] @ blocks_T + a_pack[1] @ blocks_T_next  (etc.)
    s_pack (4, HOP, F): [re_top, re_bot, im_top, im_bot] so that
        rec_top(HOP,C) = s_pack[0] @ est_re + s_pack[2] @ est_im     (etc.)
    """
    n = jnp.arange(N_FFT, dtype=jnp.float32)
    k = jnp.arange(F_BINS, dtype=jnp.float32)
    ang = 2.0 * jnp.pi * k[None, :] * n[:, None] / N_FFT      # (W, F)
    win = _hann(N_FFT)

    # analysis: windowed forward DFT, transposed, split at the hop boundary
    a_re = (jnp.cos(ang) * win[:, None]).T                    # (F, W)
    a_im = (-jnp.sin(ang) * win[:, None]).T
    a_pack = jnp.stack([a_re[:, :HOP], a_re[:, HOP:],
                        a_im[:, :HOP], a_im[:, HOP:]])        # (4, F, HOP)

    # synthesis: windowed inverse DFT (hermitian fold + 1/N), transposed, split
    c = jnp.where((k == 0) | (k == N_FFT // 2), 1.0, 2.0)
    s_re = ((c[:, None] * jnp.cos(ang.T)) / N_FFT * win[None, :]).T   # (W, F)
    s_im = ((-c[:, None] * jnp.sin(ang.T)) / N_FFT * win[None, :]).T
    s_pack = jnp.stack([s_re[:HOP], s_re[HOP:],
                        s_im[:HOP], s_im[HOP:]])              # (4, HOP, F)
    return a_pack, s_pack


def make_ola_normalizer_t(L):
    """1 / sum_t win^2 overlap-add normalizer in transposed layout (HOP, NB).

    Structured (no scatter): hop block h gets win[:HOP]^2 from frame h
    (h < NB-1) plus win[HOP:]^2 from frame h-1 (h >= 1)."""
    NB = L // HOP
    win = _hann(N_FFT)
    wsq = (win * win).reshape(2, HOP).T                        # (HOP, 2)
    z = jnp.zeros((HOP, 1), jnp.float32)
    top = jnp.concatenate([jnp.tile(wsq[:, 0:1], (1, NB - 1)), z], axis=1)
    bot = jnp.concatenate([z, jnp.tile(wsq[:, 1:2], (1, NB - 1))], axis=1)
    return 1.0 / jnp.maximum(top + bot, 1e-8)                  # (HOP, NB)


def _pick_tile_cols(cols, nb, max_tile_cols=8192):
    """Lane-tile width: a divisor of `cols`, multiple of NB (mask/roll period)
    and of 128 (lane alignment).  Prefer >= 2 grid steps (v7x megacore) while
    staying under the per-step VMEM budget; fall back to the full width."""
    step = nb * 128 // math.gcd(nb, 128)          # lcm(nb, 128)
    cands = [t for t in range(step, cols, step) if cols % t == 0]
    good = [t for t in cands if t <= max_tile_cols]
    if good:
        return max(good)
    return cols


# ---------------- fused Pallas kernel ----------------

def _wave_enhance_kernel(wave_ref, a_ref, s_ref, inv_wsum_ref, fmask_ref,
                         w1_ref, b1_ref, w2t_ref, b2_ref, out_ref):
    # wave_ref: (HOP, C) hop blocks^T; lanes = time (blocks), sublanes = sample-in-block.
    bT = wave_ref[...]                                         # (HOP, C)
    cols = bT.shape[1]
    # frame t = [block t ; block t+1]; "next block" = one-lane rotate (wrap
    # columns are garbage frames and are zeroed later via fmask).
    bT_next = pltpu.roll(bT, shift=cols - 1, axis=1)           # col c -> block c+1

    # ---- STFT analysis: split windowed-DFT bases on the MXU, no concats
    re = (jnp.dot(a_ref[0], bT, preferred_element_type=jnp.float32)
          + jnp.dot(a_ref[1], bT_next, preferred_element_type=jnp.float32))   # (F, C)
    im = (jnp.dot(a_ref[2], bT, preferred_element_type=jnp.float32)
          + jnp.dot(a_ref[3], bT_next, preferred_element_type=jnp.float32))

    # ---- magnitude compression |z|^0.5, phase kept:  z * (|z|^2)^(-1/4)
    p = re * re + im * im
    factor = jnp.where(p > 0.0, lax.rsqrt(jnp.sqrt(p)), 0.0)   # 2 EUP ops; inf branch masked
    cre = re * factor
    cim = im * factor

    # ---- enhancement net: per-bin 1x1 conv 2 -> H (ReLU) -> 2
    # SMEM scalar weights hoisted into locals once per grid step.
    hidden = w1_ref.shape[1]
    w1r = [w1_ref[0, k] for k in range(hidden)]
    w1i = [w1_ref[1, k] for k in range(hidden)]
    bb1 = [b1_ref[k] for k in range(hidden)]
    w2r = [w2t_ref[0, k] for k in range(hidden)]
    w2i = [w2t_ref[1, k] for k in range(hidden)]
    acc_re = jnp.full_like(re, b2_ref[0])          # output bias folded into init
    acc_im = jnp.full_like(im, b2_ref[1])
    for k in range(hidden):                        # H static & small -> unrolled
        h = jnp.maximum(cre * w1r[k] + cim * w1i[k] + bb1[k], 0.0)
        acc_re = acc_re + h * w2r[k]
        acc_im = acc_im + h * w2i[k]

    # ---- magnitude decompression |o|^2, phase kept:  o * |o|
    # fmask (1, C) zeroes the per-batch wrap-around (garbage) frame columns.
    scale = jnp.sqrt(acc_re * acc_re + acc_im * acc_im) * fmask_ref[...]
    est_re = acc_re * scale
    est_im = acc_im * scale

    # ---- ISTFT synthesis (split bases) + structured overlap-add:
    # block h = rec_top[:, h] + rec_bot[:, h-1]  (one-lane rotate, no scatter).
    rec_top = (jnp.dot(s_ref[0], est_re, preferred_element_type=jnp.float32)
               + jnp.dot(s_ref[2], est_im, preferred_element_type=jnp.float32))  # (HOP, C)
    rec_bot = (jnp.dot(s_ref[1], est_re, preferred_element_type=jnp.float32)
               + jnp.dot(s_ref[3], est_im, preferred_element_type=jnp.float32))
    ola = rec_top + pltpu.roll(rec_bot, shift=1, axis=1)
    out_ref[...] = ola * inv_wsum_ref[...]


# ---------------- forward pass ----------------

def wave_enhancement_forward(noisy, params):
    B, L = noisy.shape
    assert L % HOP == 0 and L >= N_FFT, "L must equal N_FFT + k*HOP"
    NB = L // HOP                      # hop blocks per batch; frames T = NB - 1
    assert params["inv_wsum_t"].shape == (HOP, NB)
    cols = B * NB

    # Lane-dense layout: (HOP, B*NB); lanes = concatenated per-batch block sequences.
    blocks_t = noisy.reshape(B * NB, HOP).T                    # wrapper-side transpose

    tile_cols = _pick_tile_cols(cols, NB)
    num_tiles = cols // tile_cols
    reps = tile_cols // NB

    # Resident per-tile constants (identical for every tile since tile_cols % NB == 0).
    inv_wsum_tiled = jnp.tile(params["inv_wsum_t"], (1, reps))          # (HOP, tile_cols)
    fmask_seg = jnp.ones((NB,), jnp.float32).at[NB - 1].set(0.0)        # frame NB-1 = garbage
    frame_mask = jnp.tile(fmask_seg, reps).reshape(1, tile_cols)        # (1, tile_cols)

    lane_spec = pl.BlockSpec((HOP, tile_cols), lambda i: (0, i))
    smem = pl.BlockSpec(memory_space=pltpu.MemorySpace.SMEM)

    out = pl.pallas_call(
        _wave_enhance_kernel,
        out_shape=jax.ShapeDtypeStruct((HOP, cols), jnp.float32),
        grid=(num_tiles,),
        in_specs=[
            lane_spec,                                               # waveform blocks^T
            pl.BlockSpec((4, F_BINS, HOP), lambda i: (0, 0, 0)),     # analysis bases (resident)
            pl.BlockSpec((4, HOP, F_BINS), lambda i: (0, 0, 0)),     # synthesis bases (resident)
            pl.BlockSpec((HOP, tile_cols), lambda i: (0, 0)),        # OLA normalizer (resident)
            pl.BlockSpec((1, tile_cols), lambda i: (0, 0)),          # valid-frame mask (resident)
            smem, smem, smem, smem],                                 # tiny net weights in SMEM
        out_specs=lane_spec,
        compiler_params=pltpu.CompilerParams(
            dimension_semantics=("parallel",),       # tiles are independent -> megacore
            vmem_limit_bytes=32 * 1024 * 1024),
    )(blocks_t, params["a_pack"], params["s_pack"], inv_wsum_tiled, frame_mask,
      params["w1"], params["b1"], params["w2t"], params["b2"])

    return out.T.reshape(B, L)


# ---------------- pure-JAX reference (naive, independent of the kernel) ----------------

def _reference_forward(noisy, params):
    B, L = noisy.shape
    T = (L - N_FFT) // HOP + 1
    win = _hann(N_FFT)
    n = jnp.arange(N_FFT, dtype=jnp.float32)
    k = jnp.arange(F_BINS, dtype=jnp.float32)
    ang = 2.0 * jnp.pi * k[None, :] * n[:, None] / N_FFT
    hp = jax.lax.Precision.HIGHEST

    idx = jnp.arange(T)[:, None] * HOP + jnp.arange(N_FFT)[None, :]
    frames = noisy[:, idx] * win[None, None, :]                        # (B, T, W)
    re = jnp.einsum('btw,wf->btf', frames, jnp.cos(ang), precision=hp)
    im = jnp.einsum('btw,wf->btf', frames, -jnp.sin(ang), precision=hp)

    mag = jnp.sqrt(re * re + im * im) ** 0.5
    ph = jnp.arctan2(im, re)
    cre, cim = mag * jnp.cos(ph), mag * jnp.sin(ph)

    h = jnp.maximum(cre[..., None] * params["w1"][0] + cim[..., None] * params["w1"][1]
                    + params["b1"], 0.0)                               # (B, T, F, H)
    ore = jnp.sum(h * params["w2t"][0], axis=-1) + params["b2"][0]
    oim = jnp.sum(h * params["w2t"][1], axis=-1) + params["b2"][1]

    emag = ore * ore + oim * oim
    eph = jnp.arctan2(oim, ore)
    ere, eim = emag * jnp.cos(eph), emag * jnp.sin(eph)

    c = jnp.where((k == 0) | (k == N_FFT // 2), 1.0, 2.0)
    rec = (jnp.einsum('btf,fw->btw', ere, c[:, None] * jnp.cos(ang.T), precision=hp)
           + jnp.einsum('btf,fw->btw', eim, -c[:, None] * jnp.sin(ang.T), precision=hp)) / N_FFT
    rec = rec * win[None, None, :]

    out = jnp.zeros((B, L), jnp.float32)
    wsum = jnp.zeros((L,), jnp.float32)
    for t in range(T):
        out = out.at[:, t * HOP:t * HOP + N_FFT].add(rec[:, t])
        wsum = wsum.at[t * HOP:t * HOP + N_FFT].add(win * win)
    return out / jnp.maximum(wsum, 1e-8)[None, :]


if __name__ == "__main__":
    key = jax.random.PRNGKey(0)
    k_in, k1, k2, k3, k4 = jax.random.split(key, 5)
    B, L = 4, 512
    noisy = jax.random.normal(k_in, (B, L), jnp.float32)

    a_pack, s_pack = make_stft_bases()
    params = dict(
        a_pack=a_pack, s_pack=s_pack,
        inv_wsum_t=make_ola_normalizer_t(L),
        w1=0.5 * jax.random.normal(k1, (2, HIDDEN), jnp.float32),
        b1=0.1 * jax.random.normal(k2, (HIDDEN,), jnp.float32),
        w2t=0.5 * jax.random.normal(k3, (2, HIDDEN), jnp.float32),
        b2=0.1 * jax.random.normal(k4, (2,), jnp.float32),
    )

    rec = jax.jit(wave_enhancement_forward)(noisy, params)
    jax.block_until_ready(rec)
    assert rec.shape == (B, L) and rec.dtype == jnp.float32

    ref = jax.jit(_reference_forward)(noisy, params)
    jax.block_until_ready(ref)
    assert bool(jnp.allclose(rec, ref, rtol=1e-2, atol=1e-2)), "kernel != reference"

    print("KERNEL_OK")
</pallas_src>

<mosaic_0001>
module attributes {stable_mosaic.version = 11 : i64} {
  func.func @_wave_enhance_kernel(%arg0: i32, %arg1: memref<8x128xf32, #tpu.memory_space<vmem>>, %arg2: memref<4x9x8xf32, #tpu.memory_space<vmem>>, %arg3: memref<4x8x9xf32, #tpu.memory_space<vmem>>, %arg4: memref<8x128xf32, #tpu.memory_space<vmem>>, %arg5: memref<1x128xf32, #tpu.memory_space<vmem>>, %arg6: memref<2x8xf32, #tpu.memory_space<smem>>, %arg7: memref<8xf32, #tpu.memory_space<smem>>, %arg8: memref<2x8xf32, #tpu.memory_space<smem>>, %arg9: memref<2xf32, #tpu.memory_space<smem>>, %arg10: memref<8x128xf32, #tpu.memory_space<vmem>>) attributes {dimension_semantics = [#tpu.dimension_semantics<parallel>], iteration_bounds = array<i64: 2>, scalar_prefetch = 0 : i64, scratch_operands = 0 : i64, tpu.core_type = #tpu.core_type<tc>, window_params = [{transform_indices = @transform_0, window_bounds = array<i64: 8, 128>}, {pipeline_mode = #tpu.pipeline_mode<synchronous>, transform_indices = @transform_1, window_bounds = array<i64: 4, 9, 8>}, {pipeline_mode = #tpu.pipeline_mode<synchronous>, transform_indices = @transform_2, window_bounds = array<i64: 4, 8, 9>}, {pipeline_mode = #tpu.pipeline_mode<synchronous>, transform_indices = @transform_3, window_bounds = array<i64: 8, 128>}, {pipeline_mode = #tpu.pipeline_mode<synchronous>, transform_indices = @transform_4, window_bounds = array<i64: 1, 128>}, {transform_indices = @transform_5, window_bounds = array<i64: 2, 8>}, {transform_indices = @transform_6, window_bounds = array<i64: 8>}, {transform_indices = @transform_7, window_bounds = array<i64: 2, 8>}, {transform_indices = @transform_8, window_bounds = array<i64: 2>}, {transform_indices = @transform_9, window_bounds = array<i64: 8, 128>}]} {
    %c0 = arith.constant 0 : index
    %c0_0 = arith.constant 0 : index
    %0 = vector.load %arg1[%c0, %c0_0] : memref<8x128xf32, #tpu.memory_space<vmem>>, vector<8x128xf32>
    %c127_i32 = arith.constant 127 : i32
    %1 = tpu.dynamic_rotate %0 by %c127_i32 dim 1 : vector<8x128xf32>, i32 -> vector<8x128xf32>
    %c0_1 = arith.constant 0 : index
    %c0_2 = arith.constant 0 : index
    %c0_3 = arith.constant 0 : index
    %2 = vector.load %arg2[%c0_1, %c0_2, %c0_3] : memref<4x9x8xf32, #tpu.memory_space<vmem>>, vector<1x9x8xf32>
    %3 = vector.shape_cast %2 : vector<1x9x8xf32> to vector<9x8xf32>
    %cst = arith.constant dense<0.000000e+00> : vector<9x128xf32>
    %4 = tpu.matmul %3, %0, %cst {dimension_numbers = #tpu.dot_dimension_numbers<[1], [0], [0], [1], [0, 0, 1, 1], [], []>} : vector<9x8xf32>, vector<8x128xf32>, vector<9x128xf32> -> vector<9x128xf32>
    %c1 = arith.constant 1 : index
    %c0_4 = arith.constant 0 : index
    %c0_5 = arith.constant 0 : index
    %5 = vector.load %arg2[%c1, %c0_4, %c0_5] : memref<4x9x8xf32, #tpu.memory_space<vmem>>, vector<1x9x8xf32>
    %6 = vector.shape_cast %5 : vector<1x9x8xf32> to vector<9x8xf32>
    %cst_6 = arith.constant dense<0.000000e+00> : vector<9x128xf32>
    %7 = tpu.matmul %6, %1, %cst_6 {dimension_numbers = #tpu.dot_dimension_numbers<[1], [0], [0], [1], [0, 0, 1, 1], [], []>} : vector<9x8xf32>, vector<8x128xf32>, vector<9x128xf32> -> vector<9x128xf32>
    %8 = arith.addf %4, %7 : vector<9x128xf32>
    %c2 = arith.constant 2 : index
    %c0_7 = arith.constant 0 : index
    %c0_8 = arith.constant 0 : index
    %9 = vector.load %arg2[%c2, %c0_7, %c0_8] : memref<4x9x8xf32, #tpu.memory_space<vmem>>, vector<1x9x8xf32>
    %10 = vector.shape_cast %9 : vector<1x9x8xf32> to vector<9x8xf32>
    %cst_9 = arith.constant dense<0.000000e+00> : vector<9x128xf32>
    %11 = tpu.matmul %10, %0, %cst_9 {dimension_numbers = #tpu.dot_dimension_numbers<[1], [0], [0], [1], [0, 0, 1, 1], [], []>} : vector<9x8xf32>, vector<8x128xf32>, vector<9x128xf32> -> vector<9x128xf32>
    %c3 = arith.constant 3 : index
    %c0_10 = arith.constant 0 : index
    %c0_11 = arith.constant 0 : index
    %12 = vector.load %arg2[%c3, %c0_10, %c0_11] : memref<4x9x8xf32, #tpu.memory_space<vmem>>, vector<1x9x8xf32>
    %13 = vector.shape_cast %12 : vector<1x9x8xf32> to vector<9x8xf32>
    %cst_12 = arith.constant dense<0.000000e+00> : vector<9x128xf32>
    %14 = tpu.matmul %13, %1, %cst_12 {dimension_numbers = #tpu.dot_dimension_numbers<[1], [0], [0], [1], [0, 0, 1, 1], [], []>} : vector<9x8xf32>, vector<8x128xf32>, vector<9x128xf32> -> vector<9x128xf32>
    %15 = arith.addf %11, %14 : vector<9x128xf32>
    %16 = arith.mulf %8, %8 : vector<9x128xf32>
    %17 = arith.mulf %15, %15 : vector<9x128xf32>
    %18 = arith.addf %16, %17 : vector<9x128xf32>
    %cst_13 = arith.constant 0.000000e+00 : f32
    %19 = vector.broadcast %cst_13 : f32 to vector<9x128xf32>
    %20 = arith.cmpf ogt, %18, %19 : vector<9x128xf32>
    %21 = math.sqrt %18 : vector<9x128xf32>
    %22 = math.rsqrt %21 : vector<9x128xf32>
    %cst_14 = arith.constant 0.000000e+00 : f32
    %23 = vector.broadcast %cst_14 : f32 to vector<9x128xf32>
    %24 = arith.select %20, %22, %23 : vector<9x128xi1>, vector<9x128xf32>
    %25 = arith.mulf %8, %24 : vector<9x128xf32>
    %26 = arith.mulf %15, %24 : vector<9x128xf32>
    %c0_15 = arith.constant 0 : index
    %c0_16 = arith.constant 0 : index
    %27 = memref.load %arg6[%c0_15, %c0_16] : memref<2x8xf32, #tpu.memory_space<smem>>
    %c0_17 = arith.constant 0 : index
    %c1_18 = arith.constant 1 : index
    %28 = memref.load %arg6[%c0_17, %c1_18] : memref<2x8xf32, #tpu.memory_space<smem>>
    %c0_19 = arith.constant 0 : index
    %c2_20 = arith.constant 2 : index
    %29 = memref.load %arg6[%c0_19, %c2_20] : memref<2x8xf32, #tpu.memory_space<smem>>
    %c0_21 = arith.constant 0 : index
    %c3_22 = arith.constant 3 : index
    %30 = memref.load %arg6[%c0_21, %c3_22] : memref<2x8xf32, #tpu.memory_space<smem>>
    %c0_23 = arith.constant 0 : index
    %c4 = arith.constant 4 : index
    %31 = memref.load %arg6[%c0_23, %c4] : memref<2x8xf32, #tpu.memory_space<smem>>
    %c0_24 = arith.constant 0 : index
    %c5 = arith.constant 5 : index
    %32 = memref.load %arg6[%c0_24, %c5] : memref<2x8xf32, #tpu.memory_space<smem>>
    %c0_25 = arith.constant 0 : index
    %c6 = arith.constant 6 : index
    %33 = memref.load %arg6[%c0_25, %c6] : memref<2x8xf32, #tpu.memory_space<smem>>
    %c0_26 = arith.constant 0 : index
    %c7 = arith.constant 7 : index
    %34 = memref.load %arg6[%c0_26, %c7] : memref<2x8xf32, #tpu.memory_space<smem>>
    %c1_27 = arith.constant 1 : index
    %c0_28 = arith.constant 0 : index
    %35 = memref.load %arg6[%c1_27, %c0_28] : memref<2x8xf32, #tpu.memory_space<smem>>
    %c1_29 = arith.constant 1 : index
    %c1_30 = arith.constant 1 : index
    %36 = memref.load %arg6[%c1_29, %c1_30] : memref<2x8xf32, #tpu.memory_space<smem>>
    %c1_31 = arith.constant 1 : index
    %c2_32 = arith.constant 2 : index
    %37 = memref.load %arg6[%c1_31, %c2_32] : memref<2x8xf32, #tpu.memory_space<smem>>
    %c1_33 = arith.constant 1 : index
    %c3_34 = arith.constant 3 : index
    %38 = memref.load %arg6[%c1_33, %c3_34] : memref<2x8xf32, #tpu.memory_space<smem>>
    %c1_35 = arith.constant 1 : index
    %c4_36 = arith.constant 4 : index
    %39 = memref.load %arg6[%c1_35, %c4_36] : memref<2x8xf32, #tpu.memory_space<smem>>
    %c1_37 = arith.constant 1 : index
    %c5_38 = arith.constant 5 : index
    %40 = memref.load %arg6[%c1_37, %c5_38] : memref<2x8xf32, #tpu.memory_space<smem>>
    %c1_39 = arith.constant 1 : index
    %c6_40 = arith.constant 6 : index
    %41 = memref.load %arg6[%c1_39, %c6_40] : memref<2x8xf32, #tpu.memory_space<smem>>
    %c1_41 = arith.constant 1 : index
    %c7_42 = arith.constant 7 : index
    %42 = memref.load %arg6[%c1_41, %c7_42] : memref<2x8xf32, #tpu.memory_space<smem>>
    %c0_43 = arith.constant 0 : index
    %43 = memref.load %arg7[%c0_43] : memref<8xf32, #tpu.memory_space<smem>>
    %c1_44 = arith.constant 1 : index
    %44 = memref.load %arg7[%c1_44] : memref<8xf32, #tpu.memory_space<smem>>
    %c2_45 = arith.constant 2 : index
    %45 = memref.load %arg7[%c2_45] : memref<8xf32, #tpu.memory_space<smem>>
    %c3_46 = arith.constant 3 : index
    %46 = memref.load %arg7[%c3_46] : memref<8xf32, #tpu.memory_space<smem>>
    %c4_47 = arith.constant 4 : index
    %47 = memref.load %arg7[%c4_47] : memref<8xf32, #tpu.memory_space<smem>>
    %c5_48 = arith.constant 5 : index
    %48 = memref.load %arg7[%c5_48] : memref<8xf32, #tpu.memory_space<smem>>
    %c6_49 = arith.constant 6 : index
    %49 = memref.load %arg7[%c6_49] : memref<8xf32, #tpu.memory_space<smem>>
    %c7_50 = arith.constant 7 : index
    %50 = memref.load %arg7[%c7_50] : memref<8xf32, #tpu.memory_space<smem>>
    %c0_51 = arith.constant 0 : index
    %c0_52 = arith.constant 0 : index
    %51 = memref.load %arg8[%c0_51, %c0_52] : memref<2x8xf32, #tpu.memory_space<smem>>
    %c0_53 = arith.constant 0 : index
    %c1_54 = arith.constant 1 : index
    %52 = memref.load %arg8[%c0_53, %c1_54] : memref<2x8xf32, #tpu.memory_space<smem>>
    %c0_55 = arith.constant 0 : index
    %c2_56 = arith.constant 2 : index
    %53 = memref.load %arg8[%c0_55, %c2_56] : memref<2x8xf32, #tpu.memory_space<smem>>
    %c0_57 = arith.constant 0 : index
    %c3_58 = arith.constant 3 : index
    %54 = memref.load %arg8[%c0_57, %c3_58] : memref<2x8xf32, #tpu.memory_space<smem>>
    %c0_59 = arith.constant 0 : index
    %c4_60 = arith.constant 4 : index
    %55 = memref.load %arg8[%c0_59, %c4_60] : memref<2x8xf32, #tpu.memory_space<smem>>
    %c0_61 = arith.constant 0 : index
    %c5_62 = arith.constant 5 : index
    %56 = memref.load %arg8[%c0_61, %c5_62] : memref<2x8xf32, #tpu.memory_space<smem>>
    %c0_63 = arith.constant 0 : index
    %c6_64 = arith.constant 6 : index
    %57 = memref.load %arg8[%c0_63, %c6_64] : memref<2x8xf32, #tpu.memory_space<smem>>
    %c0_65 = arith.constant 0 : index
    %c7_66 = arith.constant 7 : index
    %58 = memref.load %arg8[%c0_65, %c7_66] : memref<2x8xf32, #tpu.memory_space<smem>>
    %c1_67 = arith.constant 1 : index
    %c0_68 = arith.constant 0 : index
    %59 = memref.load %arg8[%c1_67, %c0_68] : memref<2x8xf32, #tpu.memory_space<smem>>
    %c1_69 = arith.constant 1 : index
    %c1_70 = arith.constant 1 : index
    %60 = memref.load %arg8[%c1_69, %c1_70] : memref<2x8xf32, #tpu.memory_space<smem>>
    %c1_71 = arith.constant 1 : index
    %c2_72 = arith.constant 2 : index
    %61 = memref.load %arg8[%c1_71, %c2_72] : memref<2x8xf32, #tpu.memory_space<smem>>
    %c1_73 = arith.constant 1 : index
    %c3_74 = arith.constant 3 : index
    %62 = memref.load %arg8[%c1_73, %c3_74] : memref<2x8xf32, #tpu.memory_space<smem>>
    %c1_75 = arith.constant 1 : index
    %c4_76 = arith.constant 4 : index
    %63 = memref.load %arg8[%c1_75, %c4_76] : memref<2x8xf32, #tpu.memory_space<smem>>
    %c1_77 = arith.constant 1 : index
    %c5_78 = arith.constant 5 : index
    %64 = memref.load %arg8[%c1_77, %c5_78] : memref<2x8xf32, #tpu.memory_space<smem>>
    %c1_79 = arith.constant 1 : index
    %c6_80 = arith.constant 6 : index
    %65 = memref.load %arg8[%c1_79, %c6_80] : memref<2x8xf32, #tpu.memory_space<smem>>
    %c1_81 = arith.constant 1 : index
    %c7_82 = arith.constant 7 : index
    %66 = memref.load %arg8[%c1_81, %c7_82] : memref<2x8xf32, #tpu.memory_space<smem>>
    %c0_83 = arith.constant 0 : index
    %67 = memref.load %arg9[%c0_83] : memref<2xf32, #tpu.memory_space<smem>>
    %68 = vector.broadcast %67 : f32 to vector<9x128xf32>
    %c1_84 = arith.constant 1 : index
    %69 = memref.load %arg9[%c1_84] : memref<2xf32, #tpu.memory_space<smem>>
    %70 = vector.broadcast %69 : f32 to vector<9x128xf32>
    %71 = vector.broadcast %27 : f32 to vector<9x128xf32>
    %72 = arith.mulf %25, %71 : vector<9x128xf32>
    %73 = vector.broadcast %35 : f32 to vector<9x128xf32>
    %74 = arith.mulf %26, %73 : vector<9x128xf32>
    %75 = arith.addf %72, %74 : vector<9x128xf32>
    %76 = vector.broadcast %43 : f32 to vector<9x128xf32>
    %77 = arith.addf %75, %76 : vector<9x128xf32>
    %cst_85 = arith.constant 0.000000e+00 : f32
    %78 = vector.broadcast %cst_85 : f32 to vector<9x128xf32>
    %79 = arith.maximumf %77, %78 : vector<9x128xf32>
    %80 = vector.broadcast %51 : f32 to vector<9x128xf32>
    %81 = arith.mulf %79, %80 : vector<9x128xf32>
    %82 = arith.addf %68, %81 : vector<9x128xf32>
    %83 = vector.broadcast %59 : f32 to vector<9x128xf32>
    %84 = arith.mulf %79, %83 : vector<9x128xf32>
    %85 = arith.addf %70, %84 : vector<9x128xf32>
    %86 = vector.broadcast %28 : f32 to vector<9x128xf32>
    %87 = arith.mulf %25, %86 : vector<9x128xf32>
    %88 = vector.broadcast %36 : f32 to vector<9x128xf32>
    %89 = arith.mulf %26, %88 : vector<9x128xf32>
    %90 = arith.addf %87, %89 : vector<9x128xf32>
    %91 = vector.broadcast %44 : f32 to vector<9x128xf32>
    %92 = arith.addf %90, %91 : vector<9x128xf32>
    %cst_86 = arith.constant 0.000000e+00 : f32
    %93 = vector.broadcast %cst_86 : f32 to vector<9x128xf32>
    %94 = arith.maximumf %92, %93 : vector<9x128xf32>
    %95 = vector.broadcast %52 : f32 to vector<9x128xf32>
    %96 = arith.mulf %94, %95 : vector<9x128xf32>
    %97 = arith.addf %82, %96 : vector<9x128xf32>
    %98 = vector.broadcast %60 : f32 to vector<9x128xf32>
    %99 = arith.mulf %94, %98 : vector<9x128xf32>
    %100 = arith.addf %85, %99 : vector<9x128xf32>
    %101 = vector.broadcast %29 : f32 to vector<9x128xf32>
    %102 = arith.mulf %25, %101 : vector<9x128xf32>
    %103 = vector.broadcast %37 : f32 to vector<9x128xf32>
    %104 = arith.mulf %26, %103 : vector<9x128xf32>
    %105 = arith.addf %102, %104 : vector<9x128xf32>
    %106 = vector.broadcast %45 : f32 to vector<9x128xf32>
    %107 = arith.addf %105, %106 : vector<9x128xf32>
    %cst_87 = arith.constant 0.000000e+00 : f32
    %108 = vector.broadcast %cst_87 : f32 to vector<9x128xf32>
    %109 = arith.maximumf %107, %108 : vector<9x128xf32>
    %110 = vector.broadcast %53 : f32 to vector<9x128xf32>
    %111 = arith.mulf %109, %110 : vector<9x128xf32>
    %112 = arith.addf %97, %111 : vector<9x128xf32>
    %113 = vector.broadcast %61 : f32 to vector<9x128xf32>
    %114 = arith.mulf %109, %113 : vector<9x128xf32>
    %115 = arith.addf %100, %114 : vector<9x128xf32>
    %116 = vector.broadcast %30 : f32 to vector<9x128xf32>
    %117 = arith.mulf %25, %116 : vector<9x128xf32>
    %118 = vector.broadcast %38 : f32 to vector<9x128xf32>
    %119 = arith.mulf %26, %118 : vector<9x128xf32>
    %120 = arith.addf %117, %119 : vector<9x128xf32>
    %121 = vector.broadcast %46 : f32 to vector<9x128xf32>
    %122 = arith.addf %120, %121 : vector<9x128xf32>
    %cst_88 = arith.constant 0.000000e+00 : f32
    %123 = vector.broadcast %cst_88 : f32 to vector<9x128xf32>
    %124 = arith.maximumf %122, %123 : vector<9x128xf32>
    %125 = vector.broadcast %54 : f32 to vector<9x128xf32>
    %126 = arith.mulf %124, %125 : vector<9x128xf32>
    %127 = arith.addf %112, %126 : vector<9x128xf32>
    %128 = vector.broadcast %62 : f32 to vector<9x128xf32>
    %129 = arith.mulf %124, %128 : vector<9x128xf32>
    %130 = arith.addf %115, %129 : vector<9x128xf32>
    %131 = vector.broadcast %31 : f32 to vector<9x128xf32>
    %132 = arith.mulf %25, %131 : vector<9x128xf32>
    %133 = vector.broadcast %39 : f32 to vector<9x128xf32>
    %134 = arith.mulf %26, %133 : vector<9x128xf32>
    %135 = arith.addf %132, %134 : vector<9x128xf32>
    %136 = vector.broadcast %47 : f32 to vector<9x128xf32>
    %137 = arith.addf %135, %136 : vector<9x128xf32>
    %cst_89 = arith.constant 0.000000e+00 : f32
    %138 = vector.broadcast %cst_89 : f32 to vector<9x128xf32>
    %139 = arith.maximumf %137, %138 : vector<9x128xf32>
    %140 = vector.broadcast %55 : f32 to vector<9x128xf32>
    %141 = arith.mulf %139, %140 : vector<9x128xf32>
    %142 = arith.addf %127, %141 : vector<9x128xf32>
    %143 = vector.broadcast %63 : f32 to vector<9x128xf32>
    %144 = arith.mulf %139, %143 : vector<9x128xf32>
    %145 = arith.addf %130, %144 : vector<9x128xf32>
    %146 = vector.broadcast %32 : f32 to vector<9x128xf32>
    %147 = arith.mulf %25, %146 : vector<9x128xf32>
    %148 = vector.broadcast %40 : f32 to vector<9x128xf32>
    %149 = arith.mulf %26, %148 : vector<9x128xf32>
    %150 = arith.addf %147, %149 : vector<9x128xf32>
    %151 = vector.broadcast %48 : f32 to vector<9x128xf32>
    %152 = arith.addf %150, %151 : vector<9x128xf32>
    %cst_90 = arith.constant 0.000000e+00 : f32
    %153 = vector.broadcast %cst_90 : f32 to vector<9x128xf32>
    %154 = arith.maximumf %152, %153 : vector<9x128xf32>
    %155 = vector.broadcast %56 : f32 to vector<9x128xf32>
    %156 = arith.mulf %154, %155 : vector<9x128xf32>
    %157 = arith.addf %142, %156 : vector<9x128xf32>
    %158 = vector.broadcast %64 : f32 to vector<9x128xf32>
    %159 = arith.mulf %154, %158 : vector<9x128xf32>
    %160 = arith.addf %145, %159 : vector<9x128xf32>
    %161 = vector.broadcast %33 : f32 to vector<9x128xf32>
    %162 = arith.mulf %25, %161 : vector<9x128xf32>
    %163 = vector.broadcast %41 : f32 to vector<9x128xf32>
    %164 = arith.mulf %26, %163 : vector<9x128xf32>
    %165 = arith.addf %162, %164 : vector<9x128xf32>
    %166 = vector.broadcast %49 : f32 to vector<9x128xf32>
    %167 = arith.addf %165, %166 : vector<9x128xf32>
    %cst_91 = arith.constant 0.000000e+00 : f32
    %168 = vector.broadcast %cst_91 : f32 to vector<9x128xf32>
    %169 = arith.maximumf %167, %168 : vector<9x128xf32>
    %170 = vector.broadcast %57 : f32 to vector<9x128xf32>
    %171 = arith.mulf %169, %170 : vector<9x128xf32>
    %172 = arith.addf %157, %171 : vector<9x128xf32>
    %173 = vector.broadcast %65 : f32 to vector<9x128xf32>
    %174 = arith.mulf %169, %173 : vector<9x128xf32>
    %175 = arith.addf %160, %174 : vector<9x128xf32>
    %176 = vector.broadcast %34 : f32 to vector<9x128xf32>
    %177 = arith.mulf %25, %176 : vector<9x128xf32>
    %178 = vector.broadcast %42 : f32 to vector<9x128xf32>
    %179 = arith.mulf %26, %178 : vector<9x128xf32>
    %180 = arith.addf %177, %179 : vector<9x128xf32>
    %181 = vector.broadcast %50 : f32 to vector<9x128xf32>
    %182 = arith.addf %180, %181 : vector<9x128xf32>
    %cst_92 = arith.constant 0.000000e+00 : f32
    %183 = vector.broadcast %cst_92 : f32 to vector<9x128xf32>
    %184 = arith.maximumf %182, %183 : vector<9x128xf32>
    %185 = vector.broadcast %58 : f32 to vector<9x128xf32>
    %186 = arith.mulf %184, %185 : vector<9x128xf32>
    %187 = arith.addf %172, %186 : vector<9x128xf32>
    %188 = vector.broadcast %66 : f32 to vector<9x128xf32>
    %189 = arith.mulf %184, %188 : vector<9x128xf32>
    %190 = arith.addf %175, %189 : vector<9x128xf32>
    %191 = arith.mulf %187, %187 : vector<9x128xf32>
    %192 = arith.mulf %190, %190 : vector<9x128xf32>
    %193 = arith.addf %191, %192 : vector<9x128xf32>
    %194 = math.sqrt %193 : vector<9x128xf32>
    %c0_93 = arith.constant 0 : index
    %c0_94 = arith.constant 0 : index
    %195 = vector.load %arg5[%c0_93, %c0_94] : memref<1x128xf32, #tpu.memory_space<vmem>>, vector<1x128xf32>
    %196 = vector.broadcast %195 : vector<1x128xf32> to vector<9x128xf32>
    %197 = arith.mulf %194, %196 : vector<9x128xf32>
    %198 = arith.mulf %187, %197 : vector<9x128xf32>
    %199 = arith.mulf %190, %197 : vector<9x128xf32>
    %c0_95 = arith.constant 0 : index
    %c0_96 = arith.constant 0 : index
    %c0_97 = arith.constant 0 : index
    %200 = vector.load %arg3[%c0_95, %c0_96, %c0_97] : memref<4x8x9xf32, #tpu.memory_space<vmem>>, vector<1x8x9xf32>
    %201 = vector.shape_cast %200 : vector<1x8x9xf32> to vector<8x9xf32>
    %cst_98 = arith.constant dense<0.000000e+00> : vector<8x128xf32>
    %202 = tpu.matmul %201, %198, %cst_98 {dimension_numbers = #tpu.dot_dimension_numbers<[1], [0], [0], [1], [0, 0, 1, 1], [], []>} : vector<8x9xf32>, vector<9x128xf32>, vector<8x128xf32> -> vector<8x128xf32>
    %c2_99 = arith.constant 2 : index
    %c0_100 = arith.constant 0 : index
    %c0_101 = arith.constant 0 : index
    %203 = vector.load %arg3[%c2_99, %c0_100, %c0_101] : memref<4x8x9xf32, #tpu.memory_space<vmem>>, vector<1x8x9xf32>
    %204 = vector.shape_cast %203 : vector<1x8x9xf32> to vector<8x9xf32>
    %cst_102 = arith.constant dense<0.000000e+00> : vector<8x128xf32>
    %205 = tpu.matmul %204, %199, %cst_102 {dimension_numbers = #tpu.dot_dimension_numbers<[1], [0], [0], [1], [0, 0, 1, 1], [], []>} : vector<8x9xf32>, vector<9x128xf32>, vector<8x128xf32> -> vector<8x128xf32>
    %206 = arith.addf %202, %205 : vector<8x128xf32>
    %c1_103 = arith.constant 1 : index
    %c0_104 = arith.constant 0 : index
    %c0_105 = arith.constant 0 : index
    %207 = vector.load %arg3[%c1_103, %c0_104, %c0_105] : memref<4x8x9xf32, #tpu.memory_space<vmem>>, vector<1x8x9xf32>
    %208 = vector.shape_cast %207 : vector<1x8x9xf32> to vector<8x9xf32>
    %cst_106 = arith.constant dense<0.000000e+00> : vector<8x128xf32>
    %209 = tpu.matmul %208, %198, %cst_106 {dimension_numbers = #tpu.dot_dimension_numbers<[1], [0], [0], [1], [0, 0, 1, 1], [], []>} : vector<8x9xf32>, vector<9x128xf32>, vector<8x128xf32> -> vector<8x128xf32>
    %c3_107 = arith.constant 3 : index
    %c0_108 = arith.constant 0 : index
    %c0_109 = arith.constant 0 : index
    %210 = vector.load %arg3[%c3_107, %c0_108, %c0_109] : memref<4x8x9xf32, #tpu.memory_space<vmem>>, vector<1x8x9xf32>
    %211 = vector.shape_cast %210 : vector<1x8x9xf32> to vector<8x9xf32>
    %cst_110 = arith.constant dense<0.000000e+00> : vector<8x128xf32>
    %212 = tpu.matmul %211, %199, %cst_110 {dimension_numbers = #tpu.dot_dimension_numbers<[1], [0], [0], [1], [0, 0, 1, 1], [], []>} : vector<8x9xf32>, vector<9x128xf32>, vector<8x128xf32> -> vector<8x128xf32>
    %213 = arith.addf %209, %212 : vector<8x128xf32>
    %c1_i32 = arith.constant 1 : i32
    %214 = tpu.dynamic_rotate %213 by %c1_i32 dim 1 : vector<8x128xf32>, i32 -> vector<8x128xf32>
    %215 = arith.addf %206, %214 : vector<8x128xf32>
    %c0_111 = arith.constant 0 : index
    %c0_112 = arith.constant 0 : index
    %216 = vector.load %arg4[%c0_111, %c0_112] : memref<8x128xf32, #tpu.memory_space<vmem>>, vector<8x128xf32>
    %217 = arith.mulf %215, %216 : vector<8x128xf32>
    %c0_113 = arith.constant 0 : index
    %c0_114 = arith.constant 0 : index
    %218 = vector.load %arg10[%c0_113, %c0_114] : memref<8x128xf32, #tpu.memory_space<vmem>>, vector<8x128xf32>
    tpu.vector_store %arg10[%c0_113, %c0_114], %217 {strides = array<i32>} : memref<8x128xf32, #tpu.memory_space<vmem>>, vector<8x128xf32>,
    return
  }
  func.func @transform_0(%arg0: i32) -> (i32, i32) {
    %c0_i32 = arith.constant 0 : i32
    %c0_i32_0 = arith.constant 0 : i32
    return %c0_i32, %arg0 : i32, i32
  }
  func.func @transform_1(%arg0: i32) -> (i32, i32, i32) {
    %c0_i32 = arith.constant 0 : i32
    %c0_i32_0 = arith.constant 0 : i32
    %c0_i32_1 = arith.constant 0 : i32
    %c0_i32_2 = arith.constant 0 : i32
    return %c0_i32, %c0_i32_0, %c0_i32_1 : i32, i32, i32
  }
  func.func @transform_2(%arg0: i32) -> (i32, i32, i32) {
    %c0_i32 = arith.constant 0 : i32
    %c0_i32_0 = arith.constant 0 : i32
    %c0_i32_1 = arith.constant 0 : i32
    %c0_i32_2 = arith.constant 0 : i32
    return %c0_i32, %c0_i32_0, %c0_i32_1 : i32, i32, i32
  }
  func.func @transform_3(%arg0: i32) -> (i32, i32) {
    %c0_i32 = arith.constant 0 : i32
    %c0_i32_0 = arith.constant 0 : i32
    %c0_i32_1 = arith.constant 0 : i32
    return %c0_i32, %c0_i32_0 : i32, i32
  }
  func.func @transform_4(%arg0: i32) -> (i32, i32) {
    %c0_i32 = arith.constant 0 : i32
    %c0_i32_0 = arith.constant 0 : i32
    %c0_i32_1 = arith.constant 0 : i32
    return %c0_i32, %c0_i32_0 : i32, i32
  }
  func.func @transform_5(%arg0: i32) -> (i32, i32) {
    %c0_i32 = arith.constant 0 : i32
    %c0_i32_0 = arith.constant 0 : i32
    %c0_i32_1 = arith.constant 0 : i32
    return %c0_i32, %c0_i32_0 : i32, i32
  }
  func.func @transform_6(%arg0: i32) -> i32 {
    %c0_i32 = arith.constant 0 : i32
    %c0_i32_0 = arith.constant 0 : i32
    return %c0_i32 : i32
  }
  func.func @transform_7(%arg0: i32) -> (i32, i32) {
    %c0_i32 = arith.constant 0 : i32
    %c0_i32_0 = arith.constant 0 : i32
    %c0_i32_1 = arith.constant 0 : i32
    return %c0_i32, %c0_i32_0 : i32, i32
  }
  func.func @transform_8(%arg0: i32) -> i32 {
    %c0_i32 = arith.constant 0 : i32
    %c0_i32_0 = arith.constant 0 : i32
    return %c0_i32 : i32
  }
  func.func @transform_9(%arg0: i32) -> (i32, i32) {
    %c0_i32 = arith.constant 0 : i32
    %c0_i32_0 = arith.constant 0 : i32
    return %c0_i32, %arg0 : i32, i32
  }
}

</mosaic_0001>

<bundles_post_ra>
// kernel: tile.18
= control target key start
LH: loop header
LB: loop body
LE: loop exit
PB: predicated region body
PF: predicated region fallthrough
CT: control target
= control target key end

     0   :  { %s22_s0 = inlined_call_operand.vmem [shape: f32[64], index: 0, kind: input, shape index: {}]   ;;  %s23_s1 = inlined_call_operand.vmem [shape: f32[2,64], index: 1, kind: output, shape index: {}]  }
   0x1   :  { %v4_v0 = vld [vmem:[%s22_s0] ss:$0 sm:$0xff] }
   0x2   :  { %5 = vst [vmem:[%s23_s1] sm:$0x3] %v4_v0 }

// kernel: tile.14
= control target key start
LH: loop header
LB: loop body
LE: loop exit
PB: predicated region body
PF: predicated region fallthrough
CT: control target
= control target key end

     0   :  { %vm36_vm0 = vcmask 1047556   ;;  %vm38_vm1 = vcmask 523264   ;;  %vm48_vm2 = vcmask 1048064   ;;  %s99_s0 = inlined_call_operand.vmem [shape: f32[8,2,64], index: 0, kind: input, shape index: {}]   ;;  %s100_s1 = inlined_call_operand.vmem [shape: f32[8,128], index: 1, kind: output, shape index: {}]  }
   0x1   :  { %v50_v0 = vld [vmem:[%s99_s0 + $0xe] sm:$0x3]  ;;  %v51_v1 = vld [vmem:[%s99_s0 + $0xc] sm:$0x3]  ;;  %v52_v2 = vld [vmem:[%s99_s0 + $0xa] sm:$0x3] }
   0x2   :  { %7 = vst [vmem:[#allocation0 + $0x38] sm:$0x3] %v50_v0  ;;  %v53_v3 = vld [vmem:[%s99_s0 + $0x8] sm:$0x3]  ;;  %v54_v4 = vld [vmem:[%s99_s0 + $0x6] sm:$0x3] }
   0x3   :  { %11 = vst [vmem:[#allocation0 + $0x30] sm:$0x3] %v51_v1  ;;  %v55_v5 = vld [vmem:[%s99_s0 + $0x4] sm:$0x3]  ;;  %v56_v6 = vld [vmem:[%s99_s0 + $0x2] sm:$0x3] }
   0x4   :  { %15 = vst [vmem:[#allocation0 + $0x28] sm:$0x3] %v52_v2  ;;  %v32_v7 = vld [vmem:[%s99_s0] sm:$0x3]  ;;  %s58_s0 = smov 64  }
   0x5   :  { %19 = vst [vmem:[#allocation0 + $0x20] sm:$0x3] %v53_v3 }
   0x6   :  { %23 = vst [vmem:[#allocation0 + $0x18] sm:$0x3] %v54_v4 }
   0x7   :  { %27 = vst [vmem:[#allocation0 + $0x10] sm:$0x3] %v55_v5 }
   0x8   :  { %31 = vst [vmem:[#allocation0 + $0x8] sm:$0x3] %v56_v6 }
   0x9   :  { %33 = vst [vmem:[#allocation0] sm:$0x3] %v32_v7 }
   0xc   :  { %v35_v8 = vld [vmem:[#allocation0] ss:$8 sm:$0xf0]   ;;  %v43_v9 = vld [vmem:[#allocation0 + $0x1] ss:$8 sm:$0xf0]  }
  0x10   :  { %v34_v10 = vld [vmem:[#allocation0] ss:$8 sm:$0xf]   ;;  %v41_v11 = vld [vmem:[#allocation0 + $0x1] ss:$8 sm:$0xf]  }
  0x11   :  { %v37_v12 = vsel %vm36_vm0, %v35_v8, %v34_v10  ;;  %v45_v13 = vsel %vm36_vm0, %v43_v9, %v41_v11 }
  0x12   :  { %46 = vrot.lane.b32.xlu0 %v45_v13, %s58_s0  ;;  %39 = vst.msk [vmem:[%s100_s1] sm:$0xff] %vm38_vm1, %v37_v12  }
  0x84   :  { %v47_v14 = vpop.permute.xlu0 %46  }
  0x85   :  { %49 = vst.msk [vmem:[%s100_s1] sm:$0xff] %vm48_vm2, %v47_v14  }

// kernel: tile.19
= control target key start
LH: loop header
LB: loop body
LE: loop exit
PB: predicated region body
PF: predicated region fallthrough
CT: control target
= control target key end

     0   :  { %vm7_vm0 = vcmask 523264   ;;  %vm13_vm1 = vcmask 1048064   ;;  %s39_s0 = inlined_call_operand.vmem [shape: f32[2,64], index: 0, kind: input, shape index: {}]   ;;  %s40_s1 = inlined_call_operand.vmem [shape: f32[1,128], index: 1, kind: output, shape index: {}]  }
   0x1   :  { %v4_v0 = vld [vmem:[%s39_s0] sm:$0x3]  ;;  %s22_s0 = smov 64  }
   0x2   :  { %5 = vst [vmem:[#allocation1] sm:$0x3] %v4_v0 }
   0x9   :  { %v10_v1 = vld [vmem:[#allocation1 + $0x1] sm:$0x1]   ;;  %v6_v2 = vld [vmem:[#allocation1] sm:$0x1]  }
   0xa   :  { %11 = vrot.lane.b32.xlu0 %v10_v1, %s22_s0  ;;  %8 = vst.msk [vmem:[#allocation0] sm:$0x1] %vm7_vm0, %v6_v2  }
  0x7c   :  { %v12_v3 = vpop.permute.xlu0 %11  }
  0x7d   :  { %14 = vst.msk [vmem:[#allocation0] sm:$0x1] %vm13_vm1, %v12_v3  }
  0x84   :  { %v17_v4 = vld [vmem:[#allocation0] sm:$0x1] }
  0x85   :  { %20 = vst [vmem:[%s40_s1] sm:$0x1] %v17_v4 }

// kernel: wave_enhancement_forward.1
= control target key start
LH: loop header
LB: loop body
LE: loop exit
PB: predicated region body
PF: predicated region fallthrough
CT: control target
= control target key end

     0   :  { %s1835_s0 = inlined_call_operand.vmem [shape: f32[8,256], index: 0, kind: input, shape index: {}]   ;;  %s1836_s1 = inlined_call_operand.vmem [shape: f32[4,9,8], index: 1, kind: input, shape index: {}]   ;;  %s1837_s2 = inlined_call_operand.vmem [shape: f32[4,8,9], index: 2, kind: input, shape index: {}]   ;;  %s1838_s3 = inlined_call_operand.vmem [shape: f32[8,128], index: 3, kind: input, shape index: {}]   ;;  %s1839_s4 = inlined_call_operand.vmem [shape: f32[1,128], index: 4, kind: input, shape index: {}]   ;;  %s1840_s5 = inlined_call_operand.vmem [shape: f32[2,8], index: 5, kind: input, shape index: {}]   ;;  %s1841_s6 = inlined_call_operand.vmem [shape: f32[8], index: 6, kind: input, shape index: {}]   ;;  %s1842_s7 = inlined_call_operand.vmem [shape: f32[2,8], index: 7, kind: input, shape index: {}]   ;;  %s1843_s8 = inlined_call_operand.vmem [shape: f32[2], index: 8, kind: input, shape index: {}]   ;;  %s1844_s9 = inlined_call_operand.vmem [shape: f32[8,256], index: 9, kind: output, shape index: {}]  }
   0x1   :  { %1884 = sst [smem:[#allocation34_spill]] %s1835_s0 }
   0x2   :  { %1885 = sst [smem:[#allocation35_spill]] %s1836_s1 }
   0x3   :  { %1886 = sst [smem:[#allocation36_spill]] %s1837_s2 }
   0x4   :  { %1887 = sst [smem:[#allocation37_spill]] %s1838_s3 }
   0x5   :  { %1888 = sst [smem:[#allocation38_spill]] %s1839_s4 }
   0x6   :  { %1889 = sst [smem:[#allocation39_spill]] %s1840_s5 }
   0x7   :  { %1890 = sst [smem:[#allocation40_spill]] %s1841_s6 }
   0x8   :  { %1891 = sst [smem:[#allocation41_spill]] %s1842_s7 }
   0x9   :  { %1892 = sst [smem:[#allocation42_spill]] %s1843_s8 }
   0xa   :  { %1893 = sst [smem:[#allocation43_spill]] %s1844_s9 }
   0xb   :  { %14 = vsyncpa [#allocation3], 0 }
   0xc   :  { %15 = vsyncpa [#allocation5], 0 }
   0xd   :  { %16 = vsyncpa [#allocation8], 0  ;;  %s1324_s30 = smov 0  }
   0xe LB: > { %1894 = sst [smem:[#allocation12_spill]] %s1266_s30  ;;  %s1333_s13 = sadd.s32 4294967295, %s1266_s30   ;;  %s1266_s30 = sphi %s1324_s30, %s22_s30  }
   0xf   : > { %s1895_s6 = sld [smem:[#allocation40_spill]]  ;;  %p1046_p0 = scmp.ge.s32.totalorder %s1266_s30, 1 }
  0x10   : > { %p247_p1 = scmp.lt.s32.totalorder %s1266_s30, 3  ;;  %p1153_p2 = scmp.eq.s32.totalorder %s1333_s13, 0 }
  0x11   : > { %s1897_s5 = sld [smem:[#allocation39_spill]]  ;;  %s1268_s24 = smov [#allocation4]  }
  0x12   : > { %p1338_p3 = pnand %p1046_p0, %p247_p1  ;;  %s1898_s7 = sld [smem:[#allocation41_spill]] }
  0x13   : > { %s1899_s8 = sld [smem:[#allocation42_spill]]  ;;  %s1269_s25 = smov [#allocation2]  }
  0x14   : > { %p1140_p4 = pneg %p1338_p3  ;;  %s1270_s26 = smov [#allocation6]  }
  0x15   : > { %s281_s12 = sshll.u32 %s1895_s6, 4  ;;  %s1271_s27 = smov [#allocation7]   ;;  %s282_s12 = int_to_ptr.vmem [resolvable:$true] %s281_s12 }
  0x16   : > { %p1141_p5 = pnand %p1153_p2, %p1140_p4 }
  0x17   : > { %s271_s17 = sshll.u32 %s1897_s5, 4  ;;  %s272_s17 = int_to_ptr.vmem [resolvable:$true] %s271_s17 }
  0x18   : > { %s291_s20 = sshll.u32 %s1898_s7, 4  ;;  %s292_s20 = int_to_ptr.vmem [resolvable:$true] %s291_s20 }
  0x19   : > { %s301_s23 = sshll.u32 %s1899_s8, 4  ;;  %321 = sbr.rel (%p1338_p3) target bundleno = 671 (0x29f), region = 56  ;;  %s302_s23 = int_to_ptr.vmem [resolvable:$true] %s301_s23 }
  0x1a   : > { %1146 = dma.vmem_to_smem (!%p1141_p5), %s282_s12, 16, %s1268_s24, [#allocation5]  }
  0x1b   : > { %1143 = dma.vmem_to_smem (!%p1141_p5), %s272_s17, 32, %s1269_s25, [#allocation3]  }
  0x1c   : > { %1149 = dma.vmem_to_smem (!%p1141_p5), %s292_s20, 32, %s1270_s26, [#allocation5]  }
  0x1d   : > { %1152 = dma.vmem_to_smem (!%p1141_p5), %s302_s23, 16, %s1271_s27, [#allocation8]  }
  0x1e   : > { %1253 = dma.done.wait (%p1153_p2), [#allocation3], 32  }
  0x1f   : > { %1255 = vsyncadd (%p1153_p2), [#allocation3], 4294967264 }
  0x20   : > { %1257 = dma.done.wait (%p1153_p2), [#allocation5], 48  }
  0x21   : > { %1259 = vsyncadd (%p1153_p2), [#allocation5], 4294967248 }
  0x22   : > { %1261 = dma.done.wait (%p1153_p2), [#allocation8], 16  }
  0x23   : > { %1263 = vsyncadd (%p1153_p2), [#allocation8], 4294967280 }
  0x24   : > { %343 = sfence }
  0x25   : > { %p372_p6 = scmp.lt.s32.totalorder %s1333_s13, 1  ;;  %s1901_s0 = sld [smem:[#allocation34_spill]]  ;;  %vm388_vm0 = vcmask 64512   ;;  %vm844_vm15 = vcmask 1040384  }
  0x26   : > { %s1272_s12 = smov 127   ;;  %s1902_s1 = sld [smem:[#allocation35_spill]] }
  0x27   : > { %s1955_s13 = smov (!%p372_p6, %s1333_s13), 1  ;;  %s1423_s14 = sld [smem:[#allocation2 + $0x2]] }
  0x28   : > { %1900 = sst [smem:[#allocation13_spill]] %s1955_s13  ;;  %s1845_s28 = sshll.u32 %s1955_s13, 3 }
  0x29   : > { %s1425_s15 = sld [smem:[#allocation2 + $0x3]] }
  0x2a   : > { %s1431_s16 = sld [smem:[#allocation2 + $0x4]] }
  0x2b   : > { %s375_s11 = scalar_lea.vmem %s1901_s0, %s1845_s28  ;;  %s1433_s17 = sld [smem:[#allocation2 + $0x5]] }
  0x2c   : > { %v380_v0 = vld [vmem:[%s375_s11] sm:$0xff]  ;;  %v1066_v3 = vld [vmem:[%s1902_s1 + $0x28] sm:$0x1]  ;;  %v1067_v5 = vld [vmem:[%s1902_s1 + $0x30] sm:$0xff]  ;;  %s1417_s11 = sld [smem:[#allocation2]] }
  0x2d   : > { %381 = vrot.lane.b32.xlu0 %v380_v0, %s1272_s12  ;;  %503 = vmatpush.msra.mxu3 %v380_v0  ;;  %v1065_v1 = vld [vmem:[%s1902_s1 + $0x20] sm:$0xff]  ;;  %v384_v4 = vld [vmem:[%s1902_s1 + $0x8] sm:$0x1]  ;;  %v1059_v6 = vld [vmem:[%s1902_s1 + $0x10] sm:$0xff]  ;;  %s1419_s12 = sld [smem:[#allocation2 + $0x1]] }
  0x2e   : > { %439 = vmatpush.msra.mxu1 %v380_v0  ;;  %1071 = vmatmul.msk.f32.vlgmr.msra.gmra.mxu3 %vm388_vm0, %v1065_v1  ;;  %v383_v2 = vld [vmem:[%s1902_s1] sm:$0xff]  ;;  %v1068_v8 = vld [vmem:[%s1902_s1 + $0x38] sm:$0x1]  ;;  %s1436_s18 = sld [smem:[#allocation2 + $0x6]]  ;;  %v659_v54 = vstv %s1423_s14 }
  0x2f   : > { %1063 = vmatmul.msk.f32.vlgmr.msra.gmra.mxu1 %vm388_vm0, %v383_v2  ;;  %v1060_v9 = vld [vmem:[%s1902_s1 + $0x18] sm:$0x1]  ;;  %1903 = sst [smem:[#allocation14_spill]] %s1425_s15  ;;  %v682_v56 = vstv %s1425_s15 }
  0x30   : > { %1904 = sst [smem:[#allocation15_spill]] %s1431_s16  ;;  %v705_v59 = vstv %s1431_s16 }
  0x31   : > { %s1438_s19 = sld [smem:[#allocation2 + $0x7]]  ;;  %v728_v63 = vstv %s1433_s17 }
  0x32   : > { %s1444_s20 = sld [smem:[#allocation2 + $0x80]]  ;;  %v613_v48 = vstv %s1417_s11 }
  0x33   : > { %s1446_s21 = sld [smem:[#allocation2 + $0x81]]  ;;  %v636_v52 = vstv %s1419_s12 }
  0x34   : > { %s1450_s22 = sld [smem:[#allocation2 + $0x82]] }
  0x35   : > { %s1452_s23 = sld [smem:[#allocation2 + $0x83]] }
  0x36   : > { %1072 = vmatmul.msk.f32.gmra.mxu3 %vm388_vm0, %v1066_v3  ;;  %s1456_s24 = sld [smem:[#allocation2 + $0x84]] }
  0x37   : > { %1064 = vmatmul.msk.f32.gmra.mxu1 %vm388_vm0, %v384_v4  ;;  %s1459_s25 = sld [smem:[#allocation2 + $0x85]] }
  0x38   : > { %1905 = sst [smem:[#allocation16_spill]] %s1444_s20  ;;  %v616_v49 = vstv %s1444_s20 }
  0x39   : > { %1906 = sst [smem:[#allocation17_spill]] %s1446_s21  ;;  %v639_v53 = vstv %s1446_s21 }
  0x3a   : > { %s1462_s26 = sld [smem:[#allocation2 + $0x86]]  ;;  %v662_v55 = vstv %s1450_s22 }
  0x3b   : > { %s1464_s27 = sld [smem:[#allocation2 + $0x87]]  ;;  %v685_v58 = vstv %s1452_s23 }
  0x3c   : > { %s1466_s29 = sld [smem:[#allocation4]]  ;;  %v708_v60 = vstv %s1456_s24  ;;  %s1273_s24 = smov 1  }
  0x3d   : > { %1907 = sst [smem:[#allocation18_spill]] %s1459_s25  ;;  %v731_v0 = vstv %s1459_s25 }
  0x3e   : > { %s1468_s10 = sld [smem:[#allocation4 + $0x1]] }
  0x3f   : > { %s1470_s28 = sld [smem:[#allocation4 + $0x2]] }
  0x40   : > { %s1472_s0 = sld [smem:[#allocation4 + $0x3]] }
  0x41   : > { %1908 = sst [smem:[#allocation19_spill]] %s1464_s27 }
  0x42   : > { %s1474_s1 = sld [smem:[#allocation4 + $0x4]]  ;;  %v621_v61 = vstv %s1466_s29 }
  0x43   : > { %s1477_s5 = sld [smem:[#allocation4 + $0x5]] }
  0x44   : > { %s1479_s6 = sld [smem:[#allocation4 + $0x6]]  ;;  %v644_v62 = vstv %s1468_s10 }
  0x45   : > { %s1482_s7 = sld [smem:[#allocation4 + $0x7]]  ;;  %v667_v2 = vstv %s1470_s28 }
  0x46   : > { %s1486_s8 = sld [smem:[#allocation6]]  ;;  %v690_v3 = vstv %s1472_s0 }
  0x47   : > { %s1490_s30 = sld [smem:[#allocation6 + $0x1]] }
  0x48   : > { %1909 = sst [smem:[#allocation20_spill]] %s1474_s1  ;;  %v713_v4 = vstv %s1474_s1 }
  0x49   : > { %1910 = sst [smem:[#allocation21_spill]] %s1477_s5 }
  0x4a   : > { %1911 = sst [smem:[#allocation22_spill]] %s1479_s6 }
  0x4b   : > { %1912 = sst [smem:[#allocation23_spill]] %s1482_s7 }
  0x4c   : > { %s1494_s9 = sld [smem:[#allocation6 + $0x2]] }
  0x4d   : > { %1913 = sst [smem:[#allocation24_spill]] %s1490_s30 }
  0x4e   : > { %s1497_s3 = sld [smem:[#allocation6 + $0x3]] }
  0x4f   : > { %s1499_s13 = sld [smem:[#allocation6 + $0x4]] }
  0x50   : > { %s1501_s2 = sld [smem:[#allocation6 + $0x5]] }
  0x51   : > { %s1503_s4 = sld [smem:[#allocation7]] }
  0x52   : > { %s1506_s7 = sld [smem:[#allocation7 + $0x1]] }
  0x53   : > { %s1510_s6 = sld [smem:[#allocation6 + $0x80]] }
  0x54   : > { %1914 = sst [smem:[#allocation25_spill]] %s1497_s3 }
  0x55   : > { %1915 = sst [smem:[#allocation26_spill]] %s1499_s13 }
  0x56   : > { %1916 = sst [smem:[#allocation27_spill]] %s1501_s2 }
  0x57   : > { %1917 = sst [smem:[#allocation28_spill]] %s1503_s4 }
  0x58   : > { %1918 = sst [smem:[#allocation29_spill]] %s1506_s7 }
  0x59   : > { %s1516_s2 = sld [smem:[#allocation6 + $0x81]] }
  0x5a   : > { %s1524_s13 = sld [smem:[#allocation6 + $0x82]] }
  0x5b   : > { %s1529_s3 = sld [smem:[#allocation6 + $0x83]] }
  0x5c   : > { %s1536_s20 = sld [smem:[#allocation6 + $0x84]] }
  0x5d   : > { %s1541_s21 = sld [smem:[#allocation6 + $0x85]] }
  0x5e   : > { %s1547_s15 = sld [smem:[#allocation6 + $0x6]] }
  0x5f   : > { %1919 = sst [smem:[#allocation30_spill]] %s1516_s2 }
  0x60   : > { %1920 = sst [smem:[#allocation31_spill]] %s1524_s13 }
  0x61   : > { %1921 = sst [smem:[#allocation32_spill]] %s1529_s3 }
  0x62   : > { %s1552_s16 = sld [smem:[#allocation6 + $0x86]] }
  0x63   : > { %s1923_s25 = sld [smem:[#allocation25_spill]] }
  0x64   : > { %s1924_s1 = sld [smem:[#allocation26_spill]] }
  0x65   : > { %s1949_s23 = sld [smem:[#allocation13_spill]] }
  0x68   : > { %1922 = sst [smem:[#allocation33_spill]] %s1552_s16 }
  0x6b   : > { %s1951_s29 = sshll.u32 %s1949_s23, 3 }
  0x9f   : > { %v382_v7 = vpop.permute.xlu0 %381 }
  0xa0   : > { %410 = vmatpush.msra.mxu0 %v382_v7  ;;  %474 = vmatpush.msra.mxu2 %v382_v7  ;;  %v751_v7 = vstv %s1436_s18 }
  0xa1   : > { %1069 = vmatmul.msk.f32.vlgmr.msra.gmra.mxu2 %vm388_vm0, %v1067_v5  ;;  %1061 = vmatmul.msk.f32.vlgmr.msra.gmra.mxu0 %vm388_vm0, %v1059_v6  ;;  %v610_v5 = vstv %s1503_s4  ;;  %v612_v6 = vstv %s1506_s7  ;;  %s1925_s4 = sld [smem:[#allocation22_spill]] }
  0xa2   : > { %s1926_s7 = sld [smem:[#allocation27_spill]] }
  0xa9   : > { %1070 = vmatmul.msk.f32.gmra.mxu2 %vm388_vm0, %v1068_v8  ;;  %1062 = vmatmul.msk.f32.gmra.mxu0 %vm388_vm0, %v1060_v9  ;;  %v754_v8 = vstv %s1462_s26 }
  0xac   : > { %v441_v10 = vpop.f32.mrf.mxu1 }
  0xb1   : > { %v505_v12 = vpop.f32.mrf.mxu3 }
  0xb4   : > { %v444_v18 = vpop.f32.mrf.mxu1 }
  0xb9   : > { %v508_v22 = vpop.f32.mrf.mxu3 }
 0x11e   : > { %v412_v11 = vpop.f32.mrf.mxu0 }
 0x11f   : > { %v1411_v13 = vadd.f32 %v441_v10, %v412_v11  ;;  %v736_v10 = vstv %s1477_s5  ;;  %v774_v11 = vstv %s1438_s19  ;;  %s1569_s5 = sld [smem:[#allocation6 + $0x7]] }
 0x121   : > { %v511_v15 = vmul.f32 %v1411_v13, %v1411_v13 }
 0x124   : > { %v476_v14 = vpop.f32.mrf.mxu2 }
 0x125   : > { %v1415_v16 = vadd.f32 %v505_v12, %v476_v14  ;;  %v626_v14 = vstv %s1486_s8 }
 0x126   : > { %v415_v17 = vpop.f32.mrf.mxu0 }
 0x127   : > { %v513_v19 = vmul.f32 %v1415_v16, %v1415_v16  ;;  %v1429_v21 = vadd.f32 %v444_v18, %v415_v17  ;;  %v649_v17 = vstv %s1490_s30  ;;  %v777_v18 = vstv %s1464_s27  ;;  %s1927_s27 = sld [smem:[#allocation23_spill]] }
 0x128   : > { %s1577_s30 = sld [smem:[#allocation6 + $0x87]] }
 0x129   : > { %v1427_v20 = vadd.f32 %v513_v19, %v511_v15  ;;  %v512_v24 = vmul.f32 %v1429_v21, %v1429_v21  ;;  %v631_v15 = vstv %s1510_s6 }
 0x12b   : > { %1176 = vrsqrt.f32 %v1427_v20  ;;  %vm526_vm1 = vcmp.eq.f32.partialorder %v1427_v20, inf  ;;  %v529_v38 = vand.u32 2147483648, %v1427_v20  ;;  %vm528_vm2 = vcmp.eq.f32.partialorder %v1427_v20, 0.0 }
 0x12c   : > { %v479_v23 = vpop.f32.mrf.mxu2  ;;  %vm517_vm5 = vcmp.gt.f32.partialorder %v1427_v20, 0.0 }
 0x12d   : > { %v1442_v25 = vadd.f32 %v508_v22, %v479_v23  ;;  %v654_v23 = vstv %s1516_s2 }
 0x12f   : > { %v514_v26 = vmul.f32 %v1442_v25, %v1442_v25 }
 0x131   : > { %v1177_v27 = vpop.eup %1176  ;;  %v1454_v28 = vadd.f32 %v514_v26, %v512_v24  ;;  %v672_v24 = vstv %s1494_s9  ;;  %v677_v26 = vstv %s1524_s13  ;;  %s1952_s13 = sld [smem:[#allocation43_spill]] }
 0x132   : > { %v520_v29 = vmul.f32 %v1177_v27, %v1427_v20 }
 0x133   : > { %1178 = vrsqrt.f32 %v1454_v28  ;;  %vm538_vm3 = vcmp.eq.f32.partialorder %v1454_v28, inf  ;;  %v541_v45 = vand.u32 2147483648, %v1454_v28  ;;  %vm540_vm4 = vcmp.eq.f32.partialorder %v1454_v28, 0.0 }
 0x134   : > { %v521_v30 = vmul.f32 %v1177_v27, %v520_v29  ;;  %v700_v29 = vstv %s1529_s3  ;;  %vm518_vm9 = vcmp.gt.f32.partialorder %v1454_v28, 0.0 }
 0x136   : > { %v522_v31 = vmul.f32 0.5, %v521_v30 }
 0x138   : > { %v523_v32 = vsub.f32 1.5, %v522_v31 }
 0x139   : > { %v1179_v33 = vpop.eup %1178 }
 0x13a   : > { %v524_v34 = vmul.f32 %v1177_v27, %v523_v32  ;;  %v532_v35 = vmul.f32 %v1179_v33, %v1454_v28  ;;  %v695_v27 = vstv %s1923_s25  ;;  %v718_v32 = vstv %s1924_s1  ;;  %s379_s1 = scalar_lea.vmem %s1952_s13, %s1951_s29 }
 0x13c   : > { %v525_v36 = vmul.f32 %v524_v34, %v1427_v20  ;;  %v533_v37 = vmul.f32 %v1179_v33, %v532_v35  ;;  %v723_v35 = vstv %s1536_s20 }
 0x13e   : > { %v527_v39 = vsel %vm526_vm1, %v1427_v20, %v525_v36  ;;  %v534_v40 = vmul.f32 0.5, %v533_v37  ;;  %v741_v36 = vstv %s1926_s7  ;;  %v746_v37 = vstv %s1541_s21  ;;  %s1946_s7 = sld [smem:[#allocation38_spill]] }
 0x13f   : > { %v1492_v41 = vsel %vm528_vm2, %v529_v38, %v527_v39  ;;  %v769_v20 = vstv %s1552_s16  ;;  %vm840_vm2 = vcmask 72704  }
 0x140   : > { %1180 = vrsqrt.f32 %v1492_v41  ;;  %v535_v42 = vsub.f32 1.5, %v534_v40  ;;  %vm549_vm7 = vweird.f32 %v1492_v41 }
 0x142   : > { %v536_v43 = vmul.f32 %v1179_v33, %v535_v42  ;;  %v759_v33 = vstv %s1925_s4  ;;  %v782_v42 = vstv %s1927_s27  ;;  %s1950_s27 = sld [smem:[#allocation37_spill]] }
 0x144   : > { %v537_v44 = vmul.f32 %v536_v43, %v1454_v28 }
 0x146   : > { %v1512_v46 = vpop.eup %1180  ;;  %v539_v47 = vsel %vm538_vm3, %v1454_v28, %v537_v44 }
 0x147   : > { %v544_v50 = vmul.f32 %v1512_v46, %v1492_v41  ;;  %v1522_v51 = vsel %vm540_vm4, %v541_v45, %v539_v47  ;;  %vm550_vm6 = vweird.f32 %v1512_v46  ;;  %v764_v41 = vstv %s1547_s15 }
 0x148   : > { %1182 = vrsqrt.f32 %v1522_v51  ;;  %vm551_vm8 = vmor %vm549_vm7, %vm550_vm6  ;;  %vm559_vm10 = vweird.f32 %v1522_v51 }
 0x149   : > { %v545_v57 = vmul.f32 %v1512_v46, %v544_v50 }
 0x14b   : > { %v546_v1 = vmul.f32 0.5, %v545_v57 }
 0x14d   : > { %v547_v9 = vsub.f32 1.5, %v546_v1 }
 0x14e   : > { %v1183_v12 = vpop.eup %1182 }
 0x14f   : > { %v548_v19 = vmul.f32 %v1512_v46, %v547_v9  ;;  %v554_v22 = vmul.f32 %v1183_v12, %v1522_v51  ;;  %vm560_vm11 = vweird.f32 %v1183_v12 }
 0x150   : > { %vm561_vm12 = vmor %vm559_vm10, %vm560_vm11 }
 0x151   : > { %v552_v30 = vsel %vm551_vm8, %v1512_v46, %v548_v19  ;;  %v555_v31 = vmul.f32 %v1183_v12, %v554_v22  ;;  %v787_v22 = vstv %s1569_s5 }
 0x152   : > { %v563_v34 = vsel %vm517_vm5, %v552_v30, 0.0 }
 0x153   : > { %v1587_v38 = vmul.f32 %v563_v34, %v1411_v13  ;;  %v1590_v39 = vmul.f32 %v563_v34, %v1415_v16  ;;  %v556_v40 = vmul.f32 0.5, %v555_v31 }
 0x155   : > { %v557_v43 = vsub.f32 1.5, %v556_v40  ;;  %v614_v44 = vmul.f32 %v613_v48, %v1587_v38  ;;  %v617_v13 = vmul.f32 %v616_v49, %v1590_v39  ;;  %v637_v16 = vmul.f32 %v636_v52, %v1587_v38 }
 0x156   : > { %v640_v45 = vmul.f32 %v639_v53, %v1590_v39  ;;  %v660_v46 = vmul.f32 %v659_v54, %v1587_v38  ;;  %v663_v47 = vmul.f32 %v662_v55, %v1590_v39  ;;  %v683_v50 = vmul.f32 %v682_v56, %v1587_v38 }
 0x157   : > { %v558_v57 = vmul.f32 %v1183_v12, %v557_v43  ;;  %v619_v1 = vadd.f32 %v617_v13, %v614_v44  ;;  %v686_v9 = vmul.f32 %v685_v58, %v1590_v39  ;;  %v706_v19 = vmul.f32 %v705_v59, %v1587_v38 }
 0x158   : > { %v642_v30 = vadd.f32 %v640_v45, %v637_v16  ;;  %v665_v31 = vadd.f32 %v663_v47, %v660_v46  ;;  %v709_v34 = vmul.f32 %v708_v60, %v1590_v39 }
 0x159   : > { %v562_v40 = vsel %vm561_vm12, %v1183_v12, %v558_v57  ;;  %v622_v44 = vadd.f32 %v621_v61, %v619_v1  ;;  %v688_v13 = vadd.f32 %v686_v9, %v683_v50  ;;  %v729_v12 = vmul.f32 %v728_v63, %v1587_v38 }
 0x15a   : > { %v564_v51 = vsel %vm518_vm9, %v562_v40, 0.0  ;;  %v1637_v16 = vadd.f32 %v644_v62, %v642_v30  ;;  %v1641_v45 = vadd.f32 %v667_v2, %v665_v31  ;;  %v711_v28 = vadd.f32 %v709_v34, %v706_v19 }
 0x15b   : > { %v566_v46 = vmul.f32 %v564_v51, %v1429_v21  ;;  %v568_v47 = vmul.f32 %v564_v51, %v1442_v25  ;;  %v732_v50 = vmul.f32 %v731_v0, %v1590_v39  ;;  %v624_v57 = vmax.f32 %v622_v44, 0.0 }
 0x15c   : > { %v647_v1 = vmax.f32 %v1637_v16, 0.0  ;;  %v670_v9 = vmax.f32 %v1641_v45, 0.0  ;;  %v1655_v30 = vadd.f32 %v690_v3, %v688_v13 }
 0x15d   : > { %v615_v21 = vmul.f32 %v613_v48, %v566_v46  ;;  %v618_v25 = vmul.f32 %v616_v49, %v568_v47  ;;  %v638_v19 = vmul.f32 %v636_v52, %v566_v46  ;;  %v641_v31 = vmul.f32 %v639_v53, %v568_v47 }
 0x15e   : > { %v661_v34 = vmul.f32 %v659_v54, %v566_v46  ;;  %v664_v40 = vmul.f32 %v662_v55, %v568_v47  ;;  %v684_v44 = vmul.f32 %v682_v56, %v566_v46  ;;  %v687_v13 = vmul.f32 %v685_v58, %v568_v47 }
 0x15f   : > { %v620_v48 = vadd.f32 %v618_v25, %v615_v21  ;;  %v643_v51 = vadd.f32 %v641_v31, %v638_v19  ;;  %v707_v49 = vmul.f32 %v705_v59, %v566_v46  ;;  %v710_v52 = vmul.f32 %v708_v60, %v568_v47 }
 0x160   : > { %v666_v53 = vadd.f32 %v664_v40, %v661_v34  ;;  %v689_v43 = vadd.f32 %v687_v13, %v684_v44  ;;  %v730_v54 = vmul.f32 %v728_v63, %v566_v46  ;;  %v733_v55 = vmul.f32 %v731_v0, %v568_v47 }
 0x161   : > { %v623_v56 = vadd.f32 %v621_v61, %v620_v48  ;;  %v646_v58 = vadd.f32 %v644_v62, %v643_v51  ;;  %v712_v21 = vadd.f32 %v710_v52, %v707_v49  ;;  %v753_v59 = vmul.f32 %v751_v7, %v566_v46 }
 0x162   : > { %v669_v60 = vadd.f32 %v667_v2, %v666_v53  ;;  %v692_v25 = vadd.f32 %v690_v3, %v689_v43  ;;  %v735_v19 = vadd.f32 %v733_v55, %v730_v54  ;;  %v756_v63 = vmul.f32 %v754_v8, %v568_v47 }
 0x163   : > { %v625_v61 = vmax.f32 %v623_v56, 0.0  ;;  %v648_v0 = vmax.f32 %v646_v58, 0.0  ;;  %v715_v62 = vadd.f32 %v713_v4, %v712_v21  ;;  %v1697_v31 = vadd.f32 %v713_v4, %v711_v28 }
 0x164   : > { %v671_v34 = vmax.f32 %v669_v60, 0.0  ;;  %v738_v2 = vadd.f32 %v736_v10, %v735_v19  ;;  %v758_v3 = vadd.f32 %v756_v63, %v753_v59  ;;  %v734_v43 = vadd.f32 %v732_v50, %v729_v12 }
 0x165   : > { %v628_v40 = vmul.f32 %v626_v14, %v625_v61  ;;  %v633_v44 = vmul.f32 %v631_v15, %v625_v61  ;;  %v694_v13 = vmax.f32 %v692_v25, 0.0  ;;  %v776_v48 = vmul.f32 %v774_v11, %v566_v46 }
 0x166   : > { %v651_v4 = vmul.f32 %v649_v17, %v648_v0  ;;  %v656_v28 = vmul.f32 %v654_v23, %v648_v0  ;;  %v674_v51 = vmul.f32 %v672_v24, %v671_v34  ;;  %v679_v12 = vmul.f32 %v677_v26, %v671_v34 }
 0x167   : > { %v630_v50 = vadd.f32 %v628_v40, %v610_v5  ;;  %v635_v49 = vadd.f32 %v633_v44, %v612_v6  ;;  %v717_v52 = vmax.f32 %v715_v62, 0.0  ;;  %v740_v53 = vmax.f32 %v738_v2, 0.0 }
 0x168   : > { %v761_v46 = vadd.f32 %v759_v33, %v758_v3  ;;  %v779_v54 = vmul.f32 %v777_v18, %v568_v47  ;;  %v627_v55 = vmul.f32 %v626_v14, %v624_v57  ;;  %v632_v56 = vmul.f32 %v631_v15, %v624_v57 }
 0x169   : > { %v653_v58 = vadd.f32 %v651_v4, %v630_v50  ;;  %v658_v21 = vadd.f32 %v656_v28, %v635_v49  ;;  %v697_v59 = vmul.f32 %v695_v27, %v694_v13  ;;  %v702_v60 = vmul.f32 %v700_v29, %v694_v13 }
 0x16a   : > { %v720_v25 = vmul.f32 %v718_v32, %v717_v52  ;;  %v725_v19 = vmul.f32 %v723_v35, %v717_v52  ;;  %v743_v47 = vmul.f32 %v741_v36, %v740_v53  ;;  %v781_v14 = vadd.f32 %v779_v54, %v776_v48 }
 0x16b   : > { %v676_v63 = vadd.f32 %v674_v51, %v653_v58  ;;  %v681_v61 = vadd.f32 %v679_v12, %v658_v21  ;;  %v629_v15 = vadd.f32 %v627_v55, %v610_v5  ;;  %v634_v57 = vadd.f32 %v632_v56, %v612_v6 }
 0x16c   : > { %v748_v0 = vmul.f32 %v746_v37, %v740_v53  ;;  %v763_v62 = vmax.f32 %v761_v46, 0.0  ;;  %v784_v34 = vadd.f32 %v782_v42, %v781_v14  ;;  %v650_v2 = vmul.f32 %v649_v17, %v647_v1 }
 0x16d   : > { %v699_v3 = vadd.f32 %v697_v59, %v676_v63  ;;  %v704_v40 = vadd.f32 %v702_v60, %v681_v61  ;;  %v655_v5 = vmul.f32 %v654_v23, %v647_v1  ;;  %v673_v6 = vmul.f32 %v672_v24, %v670_v9 }
 0x16e   : > { %v786_v44 = vmax.f32 %v784_v34, 0.0  ;;  %v652_v13 = vadd.f32 %v650_v2, %v629_v15  ;;  %v678_v17 = vmul.f32 %v677_v26, %v670_v9  ;;  %v693_v48 = vmax.f32 %v1655_v30, 0.0 }
 0x16f   : > { %v722_v4 = vadd.f32 %v720_v25, %v699_v3  ;;  %v727_v16 = vadd.f32 %v725_v19, %v704_v40  ;;  %v657_v28 = vadd.f32 %v655_v5, %v634_v57  ;;  %v716_v23 = vmax.f32 %v1697_v31, 0.0 }
 0x170   : > { %v766_v24 = vmul.f32 %v764_v41, %v763_v62  ;;  %v771_v1 = vmul.f32 %v769_v20, %v763_v62  ;;  %v675_v51 = vadd.f32 %v673_v6, %v652_v13  ;;  %v696_v45 = vmul.f32 %v695_v27, %v693_v48 }
 0x171   : > { %v745_v26 = vadd.f32 %v743_v47, %v722_v4  ;;  %v750_v9 = vadd.f32 %v748_v0, %v727_v16  ;;  %v680_v30 = vadd.f32 %v678_v17, %v657_v28  ;;  %v701_v12 = vmul.f32 %v700_v29, %v693_v48 }
 0x172   : > { %v789_v50 = vmul.f32 %v787_v22, %v786_v44  ;;  %v1944_v31 = vstv %s1577_s30  ;;  %v698_v52 = vadd.f32 %v696_v45, %v675_v51  ;;  %v719_v53 = vmul.f32 %v718_v32, %v716_v23  ;;  %s1947_s30 = sld [smem:[#allocation36_spill]] }
 0x173   : > { %v794_v49 = vmul.f32 %v1944_v31, %v786_v44  ;;  %v768_v46 = vadd.f32 %v766_v24, %v745_v26  ;;  %v773_v54 = vadd.f32 %v771_v1, %v750_v9  ;;  %v703_v55 = vadd.f32 %v701_v12, %v680_v30 }
 0x174   : > { %v737_v27 = vadd.f32 %v736_v10, %v734_v43  ;;  %v724_v56 = vmul.f32 %v723_v35, %v716_v23  ;;  %v752_v29 = vmul.f32 %v751_v7, %v1587_v38  ;;  %v755_v58 = vmul.f32 %v754_v8, %v1590_v39  ;;  %v1175_v23 = vld [vmem:[%s1946_s7] ss:$0 sm:$0xff] }
 0x175   : > { %v775_v21 = vmul.f32 %v774_v11, %v1587_v38  ;;  %v791_v32 = vadd.f32 %v789_v50, %v768_v46  ;;  %v796_v59 = vadd.f32 %v794_v49, %v773_v54  ;;  %v721_v25 = vadd.f32 %v719_v53, %v698_v52 }
 0x176   : > { %v739_v60 = vmax.f32 %v737_v27, 0.0  ;;  %v726_v19 = vadd.f32 %v724_v56, %v703_v55  ;;  %v757_v10 = vadd.f32 %v755_v58, %v752_v29  ;;  %v778_v35 = vmul.f32 %v777_v18, %v1590_v39 }
 0x177   : > { %v798_v43 = vmul.f32 %v791_v32, %v791_v32  ;;  %v800_v7 = vmul.f32 %v796_v59, %v796_v59 }
 0x178   : > { %v742_v8 = vmul.f32 %v741_v36, %v739_v60  ;;  %v747_v11 = vmul.f32 %v746_v37, %v739_v60  ;;  %v760_v38 = vadd.f32 %v759_v33, %v757_v10  ;;  %v780_v47 = vadd.f32 %v778_v35, %v775_v21  ;;  %s1948_s15 = smov %s1947_s30  ;;  %v1117_v55 = vld [vmem:[%s1947_s30 + $0x18] sm:$0xff] }
 0x179   : > { %v802_v14 = vadd.f32 %v800_v7, %v798_v43  ;;  %v1945_v37 = vmov %v1944_v31  ;;  %v1116_v27 = vld [vmem:[%s1948_s15 + $0x8] sm:$0xff]  ;;  %v1111_v56 = vld [vmem:[%s1948_s15 + $0x10] sm:$0xff]  ;;  %v837_v29 = vld [vmem:[%s1948_s15] sm:$0xff] }
 0x17a   : > { %v744_v63 = vadd.f32 %v742_v8, %v721_v25  ;;  %v749_v61 = vadd.f32 %v747_v11, %v726_v19  ;;  %v762_v15 = vmax.f32 %v760_v38, 0.0  ;;  %v783_v57 = vadd.f32 %v782_v42, %v780_v47  ;;  %v947_v19 = vld [vmem:[%s1950_s27] sm:$0xff] }
 0x17b   : > { %1184 = vrsqrt.f32 %v802_v14  ;;  %vm822_vm13 = vcmp.eq.f32.partialorder %v802_v14, inf  ;;  %v825_v16 = vand.u32 2147483648, %v802_v14  ;;  %vm824_vm14 = vcmp.eq.f32.partialorder %v802_v14, 0.0 }
 0x17c   : > { %v765_v18 = vmul.f32 %v764_v41, %v762_v15  ;;  %v770_v39 = vmul.f32 %v769_v20, %v762_v15  ;;  %v785_v0 = vmax.f32 %v783_v57, 0.0 }
 0x17e   : > { %v767_v62 = vadd.f32 %v765_v18, %v744_v63  ;;  %v772_v36 = vadd.f32 %v770_v39, %v749_v61  ;;  %v788_v34 = vmul.f32 %v787_v22, %v785_v0  ;;  %v793_v2 = vmul.f32 %v1945_v37, %v785_v0 }
 0x180   : > { %v790_v33 = vadd.f32 %v788_v34, %v767_v62  ;;  %v795_v3 = vadd.f32 %v793_v2, %v772_v36 }
 0x181   : > { %v1185_v40 = vpop.eup %1184 }
 0x182   : > { %v816_v5 = vmul.f32 %v1185_v40, %v802_v14  ;;  %v797_v6 = vmul.f32 %v790_v33, %v790_v33  ;;  %v799_v44 = vmul.f32 %v795_v3, %v795_v3 }
 0x184   : > { %v817_v13 = vmul.f32 %v1185_v40, %v816_v5  ;;  %v801_v42 = vadd.f32 %v799_v44, %v797_v6 }
 0x186   : > { %v818_v17 = vmul.f32 0.5, %v817_v13  ;;  %1186 = vrsqrt.f32 %v801_v42  ;;  %vm810_vm0 = vcmp.eq.f32.partialorder %v801_v42, inf  ;;  %v813_v31 = vand.u32 2147483648, %v801_v42 }
 0x187   : > { %vm812_vm1 = vcmp.eq.f32.partialorder %v801_v42, 0.0 }
 0x188   : > { %v819_v41 = vsub.f32 1.5, %v818_v17 }
 0x18a   : > { %v820_v48 = vmul.f32 %v1185_v40, %v819_v41 }
 0x18c   : > { %v1187_v20 = vpop.eup %1186  ;;  %v821_v4 = vmul.f32 %v820_v48, %v802_v14 }
 0x18d   : > { %v804_v28 = vmul.f32 %v1187_v20, %v801_v42 }
 0x18e   : > { %v823_v22 = vsel %vm822_vm13, %v802_v14, %v821_v4 }
 0x18f   : > { %v826_v24 = vsel %vm824_vm14, %v825_v16, %v823_v22  ;;  %v805_v1 = vmul.f32 %v1187_v20, %v804_v28 }
 0x190   : > { %v832_v51 = vmul.f32 %v1175_v23, %v826_v24 }
 0x191   : > { %v806_v45 = vmul.f32 0.5, %v805_v1 }
 0x192   : > { %v836_v26 = vmul.f32 %v832_v51, %v796_v59  ;;  %v834_v9 = vmul.f32 %v832_v51, %v791_v32 }
 0x193   : > { %v807_v30 = vsub.f32 1.5, %v806_v45 }
 0x194   : > { %1112 = vmatpush.msk.msrb.mxu0 %vm844_vm15, %v836_v26  ;;  %1114 = vmatpush.msk.msrb.mxu1 %vm844_vm15, %v834_v9 }
 0x195   : > { %1118 = vmatpush.msk.msrb.mxu2 %vm844_vm15, %v836_v26  ;;  %1120 = vmatpush.msk.msrb.mxu3 %vm844_vm15, %v834_v9  ;;  %v808_v12 = vmul.f32 %v1187_v20, %v807_v30 }
 0x197   : > { %v809_v50 = vmul.f32 %v808_v12, %v801_v42 }
 0x199   : > { %v811_v49 = vsel %vm810_vm0, %v801_v42, %v809_v50 }
 0x19a   : > { %v814_v52 = vsel %vm812_vm1, %v813_v31, %v811_v49 }
 0x19b   : > { %v831_v53 = vmul.f32 %v1175_v23, %v814_v52 }
 0x19d   : > { %v835_v46 = vmul.f32 %v831_v53, %v795_v3  ;;  %v833_v54 = vmul.f32 %v831_v53, %v790_v33 }
 0x19f   : > { %863 = vmatpush.msrb.mxu0 %v835_v46  ;;  %889 = vmatpush.msrb.mxu1 %v833_v54 }
 0x1a0   : > { %916 = vmatpush.msrb.mxu2 %v835_v46  ;;  %939 = vmatpush.msrb.mxu3 %v833_v54 }
 0x1a1   : > { %1119 = vmatmul.msk.f32.vlgmr.msrb.gmra.mxu2 %vm840_vm2, %v1117_v55  ;;  %1121 = vmatmul.msk.f32.vlgmr.msrb.gmra.mxu3 %vm840_vm2, %v1116_v27 }
 0x1a2   : > { %1113 = vmatmul.msk.f32.vlgmr.msrb.gmra.mxu0 %vm840_vm2, %v1111_v56  ;;  %1115 = vmatmul.msk.f32.vlgmr.msrb.gmra.mxu1 %vm840_vm2, %v837_v29 }
 0x21f   : > { %v865_v59 = vpop.f32.mrf.mxu0  ;;  %v891_v60 = vpop.f32.mrf.mxu1 }
 0x220   : > { %v892_v25 = vadd.f32 %v891_v60, %v865_v59 }
 0x224   : > { %v918_v58 = vpop.f32.mrf.mxu2  ;;  %v941_v21 = vpop.f32.mrf.mxu3 }
 0x225   : > { %v942_v32 = vadd.f32 %v941_v21, %v918_v58 }
 0x227   : > { %944 = vrot.lane.b32.xlu0 %v942_v32, %s1273_s24 }
 0x299   : > { %v945_v10 = vpop.permute.xlu0 %944 }
 0x29a   : > { %v946_v35 = vadd.f32 %v945_v10, %v892_v25 }
 0x29c   : > { %v948_v43 = vmul.f32 %v947_v19, %v946_v35 }
 0x29e   : > { %949 = vst [vmem:[%s379_s1] sm:$0xff] %v948_v43 }
 0x29f PF: > { %s1953_s3 = sld [smem:[#allocation12_spill]] }
 0x2a5   : > { %s22_s30 = sadd.s32 1, %s1953_s3  }
 0x2a6   : > { %p19_p7 = scmp.ge.s32.totalorder %s22_s30, 4  }
 0x2a8   :  { %21 = sbr.rel (!%p19_p7) target bundleno = 14 (0xe), region = 109 }
 0x2ad   :  { %969 = vsyncpa [#allocation3], 1 }
 0x2ae   :  { %971 = vsyncpa [#allocation3 + $0x1], 1 }
 0x2af   :  { %972 = vsyncpa [#allocation5], 1 }
 0x2b0   :  { %973 = vsyncpa [#allocation8], 1 }

</bundles_post_ra>
